<compile_context>
chip_gen: v7x
topology: tpu7x:2x2x1
jax: 0.10.0
libtpu: 0.0.40
codegen_flags: <defaults>
</compile_context>

<pallas_src>
import jax
import jax.numpy as jnp
from jax.experimental import pallas as pl
from jax.experimental.pallas import tpu as pltpu

NEG_SLOPE = 0.01          # default negative_slope of nn.LeakyReLU
LANE = 128                # vreg lane width
SUBLANE = 8               # vreg sublane count
MAX_BATCH_TILE = 512      # rows of x per grid step (sweepable; fits default VMEM)


def _round_up(v, m):
    return ((v + m - 1) // m) * m


def _mlp_head(x, w1t, b1, w2t, b2):
    """Linear -> LeakyReLU -> Linear on an in-VMEM tile.

    Weights are pre-transposed (contraction dim leading), so both matmuls feed
    the MXU directly with no in-kernel transpose. Accumulation / bias add /
    LeakyReLU happen in f32.
    """
    h = jnp.dot(x, w1t, preferred_element_type=jnp.float32) + b1
    h = jnp.where(h > 0, h, NEG_SLOPE * h)                       # LeakyReLU (VPU)
    y = jnp.dot(h.astype(x.dtype), w2t, preferred_element_type=jnp.float32) + b2
    return y


def _make_kernel(n_heads):
    """Kernel computing `n_heads` independent MLP heads that share the x tile."""

    def kernel(x_ref, *refs):
        w_refs = refs[: 4 * n_heads]
        out_refs = refs[4 * n_heads:]
        x = x_ref[...]
        for h in range(n_heads):            # static unroll
            w1, b1, w2, b2 = w_refs[4 * h: 4 * h + 4]
            y = _mlp_head(x, w1[...], b1[...], w2[...], b2[...])
            out_refs[h][...] = y.astype(out_refs[h].dtype)

    return kernel


def _fc_pallas(x, head_params, out_dims, compute_dtype=None):
    """Run 1..N MLP heads over the same input in a single pallas_call.

    head_params: list of PyTorch-layout tuples (W1 (Cin,Cin), b1 (Cin,),
                 W2 (Cout,Cin), b2 (Cout,)).
    Returns a list of (B, out_dim) arrays (x.dtype).
    """
    B, Cin = x.shape
    out_dtype = x.dtype
    cdt = compute_dtype if compute_dtype is not None else x.dtype

    Cin_p = _round_up(Cin, LANE)

    # Batch tiling: pad to sublane multiple, then to a whole number of tiles.
    B8 = _round_up(B, SUBLANE)
    TB = min(MAX_BATCH_TILE, B8)
    B_p = _round_up(B8, TB)
    grid = (B_p // TB,)

    xp = jnp.pad(x, ((0, B_p - B), (0, Cin_p - Cin))).astype(cdt)

    flat_inputs = [xp]
    in_specs = [pl.BlockSpec((TB, Cin_p), lambda i: (i, 0))]
    out_shapes, out_specs = [], []
    flops = 0
    bytes_accessed = xp.size * xp.dtype.itemsize

    for (w1, b1, w2, b2), cout in zip(head_params, out_dims):
        Cout_p = _round_up(cout, LANE)
        # Pre-transpose + zero-pad to lane-dense shapes (one-time, XLA side).
        w1t = jnp.pad(w1.T, ((0, Cin_p - Cin), (0, Cin_p - Cin))).astype(cdt)
        b1p = jnp.pad(b1, (0, Cin_p - Cin)).reshape(1, Cin_p).astype(jnp.float32)
        w2t = jnp.pad(w2.T, ((0, Cin_p - Cin), (0, Cout_p - cout))).astype(cdt)
        b2p = jnp.pad(b2, (0, Cout_p - cout)).reshape(1, Cout_p).astype(jnp.float32)

        flat_inputs += [w1t, b1p, w2t, b2p]
        # Constant index_map -> weights/biases fetched once, resident across grid.
        in_specs += [
            pl.BlockSpec((Cin_p, Cin_p), lambda i: (0, 0)),
            pl.BlockSpec((1, Cin_p), lambda i: (0, 0)),
            pl.BlockSpec((Cin_p, Cout_p), lambda i: (0, 0)),
            pl.BlockSpec((1, Cout_p), lambda i: (0, 0)),
        ]
        out_shapes.append(jax.ShapeDtypeStruct((B_p, Cout_p), out_dtype))
        out_specs.append(pl.BlockSpec((TB, Cout_p), lambda i: (i, 0)))

        flops += 2 * B_p * Cin_p * Cin_p + 2 * B_p * Cin_p * Cout_p
        for a in (w1t, b1p, w2t, b2p):
            bytes_accessed += a.size * a.dtype.itemsize
        bytes_accessed += B_p * Cout_p * jnp.dtype(out_dtype).itemsize

    outs = pl.pallas_call(
        _make_kernel(len(head_params)),
        out_shape=tuple(out_shapes),
        grid=grid,
        in_specs=in_specs,
        out_specs=tuple(out_specs),
        compiler_params=pltpu.CompilerParams(
            dimension_semantics=("parallel",)),
        cost_estimate=pl.CostEstimate(
            flops=flops, transcendentals=0, bytes_accessed=bytes_accessed),
    )(*flat_inputs)

    return [o[:B, :cout] for o, cout in zip(outs, out_dims)]


def init_fc_layer_params(key, in_channel, out_channel, dtype=jnp.float32):
    """Deterministic init matching nn.Linear shapes (W: (out, in), b: (out,))."""
    ks = jax.random.split(key, 8)
    bound = lambda fan_in: 1.0 / jnp.sqrt(fan_in)

    def linear(kw, kb, fan_in, fan_out):
        w = jax.random.uniform(kw, (fan_out, fan_in), dtype, -bound(fan_in), bound(fan_in))
        b = jax.random.uniform(kb, (fan_out,), dtype, -bound(fan_in), bound(fan_in))
        return w, b

    pw1, pb1 = linear(ks[0], ks[1], in_channel, in_channel)   # projection head
    pw2, pb2 = linear(ks[2], ks[3], in_channel, 64)
    cw1, cb1 = linear(ks[4], ks[5], in_channel, in_channel)   # classification head
    cw2, cb2 = linear(ks[6], ks[7], in_channel, out_channel)
    return {"proj": (pw1, pb1, pw2, pb2), "cls": (cw1, cb1, cw2, cb2)}


def fc_layer_forward(params, x, inference=False, compute_dtype=None):
    """Matches fc_layer.forward: returns (classification_output, projection).

    compute_dtype=jnp.bfloat16 is recommended on v6e/v7x (f32 accumulation is
    kept inside the kernel either way).
    """
    cls = params["cls"]
    out_channel = cls[2].shape[0]
    if inference:
        (output,) = _fc_pallas(x, [cls], [out_channel], compute_dtype)
        return output, None
    proj = params["proj"]
    proj_dim = proj[2].shape[0]
    output, projection = _fc_pallas(
        x, [cls, proj], [out_channel, proj_dim], compute_dtype)
    return output, projection


if __name__ == "__main__":
    key = jax.random.PRNGKey(0)
    k_x, k_p = jax.random.split(key)

    batch, in_channel, out_channel = 8, 32, 16
    x = jax.random.normal(k_x, (batch, in_channel), dtype=jnp.float32)
    params = init_fc_layer_params(k_p, in_channel, out_channel)

    # training path: fused cls+proj in one pallas_call
    output, projection = fc_layer_forward(params, x, inference=False)
    jax.block_until_ready(output)
    jax.block_until_ready(projection)
    assert output.shape == (batch, out_channel)
    assert projection.shape == (batch, 64)

    # inference path
    out_inf, proj_inf = fc_layer_forward(params, x, inference=True)
    jax.block_until_ready(out_inf)
    assert proj_inf is None
    assert out_inf.shape == (batch, out_channel)

    # correctness check vs plain JAX reference
    def ref_mlp(x, w1, b1, w2, b2):
        h = x @ w1.T + b1
        h = jnp.where(h > 0, h, NEG_SLOPE * h)
        return h @ w2.T + b2

    ref_out = ref_mlp(x, *params["cls"])
    ref_proj = ref_mlp(x, *params["proj"])
    assert jnp.allclose(output, ref_out, atol=1e-5, rtol=1e-5)
    assert jnp.allclose(projection, ref_proj, atol=1e-5, rtol=1e-5)
    assert jnp.allclose(out_inf, ref_out, atol=1e-5, rtol=1e-5)

    # bf16-operand path (v6e/v7x MXU friendly), loose tolerance
    out_bf16, proj_bf16 = fc_layer_forward(
        params, x, inference=False, compute_dtype=jnp.bfloat16)
    jax.block_until_ready(out_bf16)
    assert jnp.allclose(out_bf16, ref_out, atol=5e-2, rtol=5e-2)
    assert jnp.allclose(proj_bf16, ref_proj, atol=5e-2, rtol=5e-2)

    print("KERNEL_OK")
</pallas_src>

<mosaic_0001>
module attributes {stable_mosaic.version = 11 : i64} {
  func.func @kernel(%arg0: i32, %arg1: memref<8x128xf32, #tpu.memory_space<vmem>>, %arg2: memref<128x128xf32, #tpu.memory_space<vmem>>, %arg3: memref<1x128xf32, #tpu.memory_space<vmem>>, %arg4: memref<128x128xf32, #tpu.memory_space<vmem>>, %arg5: memref<1x128xf32, #tpu.memory_space<vmem>>, %arg6: memref<128x128xf32, #tpu.memory_space<vmem>>, %arg7: memref<1x128xf32, #tpu.memory_space<vmem>>, %arg8: memref<128x128xf32, #tpu.memory_space<vmem>>, %arg9: memref<1x128xf32, #tpu.memory_space<vmem>>, %arg10: memref<8x128xf32, #tpu.memory_space<vmem>>, %arg11: memref<8x128xf32, #tpu.memory_space<vmem>>) attributes {dimension_semantics = [#tpu.dimension_semantics<parallel>], iteration_bounds = array<i64: 1>, scalar_prefetch = 0 : i64, scratch_operands = 0 : i64, tpu.core_type = #tpu.core_type<tc>, window_params = [{transform_indices = @transform_0, window_bounds = array<i64: 8, 128>}, {pipeline_mode = #tpu.pipeline_mode<synchronous>, transform_indices = @transform_1, window_bounds = array<i64: 128, 128>}, {pipeline_mode = #tpu.pipeline_mode<synchronous>, transform_indices = @transform_2, window_bounds = array<i64: 1, 128>}, {pipeline_mode = #tpu.pipeline_mode<synchronous>, transform_indices = @transform_3, window_bounds = array<i64: 128, 128>}, {pipeline_mode = #tpu.pipeline_mode<synchronous>, transform_indices = @transform_4, window_bounds = array<i64: 1, 128>}, {pipeline_mode = #tpu.pipeline_mode<synchronous>, transform_indices = @transform_5, window_bounds = array<i64: 128, 128>}, {pipeline_mode = #tpu.pipeline_mode<synchronous>, transform_indices = @transform_6, window_bounds = array<i64: 1, 128>}, {pipeline_mode = #tpu.pipeline_mode<synchronous>, transform_indices = @transform_7, window_bounds = array<i64: 128, 128>}, {pipeline_mode = #tpu.pipeline_mode<synchronous>, transform_indices = @transform_8, window_bounds = array<i64: 1, 128>}, {transform_indices = @transform_9, window_bounds = array<i64: 8, 128>}, {transform_indices = @transform_10, window_bounds = array<i64: 8, 128>}]} {
    %c0 = arith.constant 0 : index
    %c0_0 = arith.constant 0 : index
    %0 = vector.load %arg1[%c0, %c0_0] : memref<8x128xf32, #tpu.memory_space<vmem>>, vector<8x128xf32>
    %c0_1 = arith.constant 0 : index
    %c0_2 = arith.constant 0 : index
    %1 = vector.load %arg2[%c0_1, %c0_2] : memref<128x128xf32, #tpu.memory_space<vmem>>, vector<128x128xf32>
    %c0_3 = arith.constant 0 : index
    %c0_4 = arith.constant 0 : index
    %2 = vector.load %arg3[%c0_3, %c0_4] : memref<1x128xf32, #tpu.memory_space<vmem>>, vector<1x128xf32>
    %c0_5 = arith.constant 0 : index
    %c0_6 = arith.constant 0 : index
    %3 = vector.load %arg4[%c0_5, %c0_6] : memref<128x128xf32, #tpu.memory_space<vmem>>, vector<128x128xf32>
    %c0_7 = arith.constant 0 : index
    %c0_8 = arith.constant 0 : index
    %4 = vector.load %arg5[%c0_7, %c0_8] : memref<1x128xf32, #tpu.memory_space<vmem>>, vector<1x128xf32>
    %cst = arith.constant dense<0.000000e+00> : vector<8x128xf32>
    %5 = tpu.matmul %0, %1, %cst {dimension_numbers = #tpu.dot_dimension_numbers<[1], [0], [0], [1], [0, 0, 1, 1], [], []>} : vector<8x128xf32>, vector<128x128xf32>, vector<8x128xf32> -> vector<8x128xf32>
    %6 = vector.broadcast %2 : vector<1x128xf32> to vector<8x128xf32>
    %7 = arith.addf %5, %6 : vector<8x128xf32>
    %cst_9 = arith.constant 0.000000e+00 : f32
    %8 = vector.broadcast %cst_9 : f32 to vector<8x128xf32>
    %9 = arith.cmpf ogt, %7, %8 : vector<8x128xf32>
    %cst_10 = arith.constant 0.00999999977 : f32
    %10 = vector.broadcast %cst_10 : f32 to vector<8x128xf32>
    %11 = arith.mulf %10, %7 : vector<8x128xf32>
    %12 = arith.select %9, %7, %11 : vector<8x128xi1>, vector<8x128xf32>
    %cst_11 = arith.constant dense<0.000000e+00> : vector<8x128xf32>
    %13 = tpu.matmul %12, %3, %cst_11 {dimension_numbers = #tpu.dot_dimension_numbers<[1], [0], [0], [1], [0, 0, 1, 1], [], []>} : vector<8x128xf32>, vector<128x128xf32>, vector<8x128xf32> -> vector<8x128xf32>
    %14 = vector.broadcast %4 : vector<1x128xf32> to vector<8x128xf32>
    %15 = arith.addf %13, %14 : vector<8x128xf32>
    %c0_12 = arith.constant 0 : index
    %c0_13 = arith.constant 0 : index
    %16 = vector.load %arg10[%c0_12, %c0_13] : memref<8x128xf32, #tpu.memory_space<vmem>>, vector<8x128xf32>
    tpu.vector_store %arg10[%c0_12, %c0_13], %15 {strides = array<i32>} : memref<8x128xf32, #tpu.memory_space<vmem>>, vector<8x128xf32>,
    %c0_14 = arith.constant 0 : index
    %c0_15 = arith.constant 0 : index
    %17 = vector.load %arg6[%c0_14, %c0_15] : memref<128x128xf32, #tpu.memory_space<vmem>>, vector<128x128xf32>
    %c0_16 = arith.constant 0 : index
    %c0_17 = arith.constant 0 : index
    %18 = vector.load %arg7[%c0_16, %c0_17] : memref<1x128xf32, #tpu.memory_space<vmem>>, vector<1x128xf32>
    %c0_18 = arith.constant 0 : index
    %c0_19 = arith.constant 0 : index
    %19 = vector.load %arg8[%c0_18, %c0_19] : memref<128x128xf32, #tpu.memory_space<vmem>>, vector<128x128xf32>
    %c0_20 = arith.constant 0 : index
    %c0_21 = arith.constant 0 : index
    %20 = vector.load %arg9[%c0_20, %c0_21] : memref<1x128xf32, #tpu.memory_space<vmem>>, vector<1x128xf32>
    %cst_22 = arith.constant dense<0.000000e+00> : vector<8x128xf32>
    %21 = tpu.matmul %0, %17, %cst_22 {dimension_numbers = #tpu.dot_dimension_numbers<[1], [0], [0], [1], [0, 0, 1, 1], [], []>} : vector<8x128xf32>, vector<128x128xf32>, vector<8x128xf32> -> vector<8x128xf32>
    %22 = vector.broadcast %18 : vector<1x128xf32> to vector<8x128xf32>
    %23 = arith.addf %21, %22 : vector<8x128xf32>
    %cst_23 = arith.constant 0.000000e+00 : f32
    %24 = vector.broadcast %cst_23 : f32 to vector<8x128xf32>
    %25 = arith.cmpf ogt, %23, %24 : vector<8x128xf32>
    %cst_24 = arith.constant 0.00999999977 : f32
    %26 = vector.broadcast %cst_24 : f32 to vector<8x128xf32>
    %27 = arith.mulf %26, %23 : vector<8x128xf32>
    %28 = arith.select %25, %23, %27 : vector<8x128xi1>, vector<8x128xf32>
    %cst_25 = arith.constant dense<0.000000e+00> : vector<8x128xf32>
    %29 = tpu.matmul %28, %19, %cst_25 {dimension_numbers = #tpu.dot_dimension_numbers<[1], [0], [0], [1], [0, 0, 1, 1], [], []>} : vector<8x128xf32>, vector<128x128xf32>, vector<8x128xf32> -> vector<8x128xf32>
    %30 = vector.broadcast %20 : vector<1x128xf32> to vector<8x128xf32>
    %31 = arith.addf %29, %30 : vector<8x128xf32>
    %c0_26 = arith.constant 0 : index
    %c0_27 = arith.constant 0 : index
    %32 = vector.load %arg11[%c0_26, %c0_27] : memref<8x128xf32, #tpu.memory_space<vmem>>, vector<8x128xf32>
    tpu.vector_store %arg11[%c0_26, %c0_27], %31 {strides = array<i32>} : memref<8x128xf32, #tpu.memory_space<vmem>>, vector<8x128xf32>,
    return
  }
  func.func @transform_0(%arg0: i32) -> (i32, i32) {
    %c0_i32 = arith.constant 0 : i32
    %c0_i32_0 = arith.constant 0 : i32
    return %arg0, %c0_i32 : i32, i32
  }
  func.func @transform_1(%arg0: i32) -> (i32, i32) {
    %c0_i32 = arith.constant 0 : i32
    %c0_i32_0 = arith.constant 0 : i32
    %c0_i32_1 = arith.constant 0 : i32
    return %c0_i32, %c0_i32_0 : i32, i32
  }
  func.func @transform_2(%arg0: i32) -> (i32, i32) {
    %c0_i32 = arith.constant 0 : i32
    %c0_i32_0 = arith.constant 0 : i32
    %c0_i32_1 = arith.constant 0 : i32
    return %c0_i32, %c0_i32_0 : i32, i32
  }
  func.func @transform_3(%arg0: i32) -> (i32, i32) {
    %c0_i32 = arith.constant 0 : i32
    %c0_i32_0 = arith.constant 0 : i32
    %c0_i32_1 = arith.constant 0 : i32
    return %c0_i32, %c0_i32_0 : i32, i32
  }
  func.func @transform_4(%arg0: i32) -> (i32, i32) {
    %c0_i32 = arith.constant 0 : i32
    %c0_i32_0 = arith.constant 0 : i32
    %c0_i32_1 = arith.constant 0 : i32
    return %c0_i32, %c0_i32_0 : i32, i32
  }
  func.func @transform_5(%arg0: i32) -> (i32, i32) {
    %c0_i32 = arith.constant 0 : i32
    %c0_i32_0 = arith.constant 0 : i32
    %c0_i32_1 = arith.constant 0 : i32
    return %c0_i32, %c0_i32_0 : i32, i32
  }
  func.func @transform_6(%arg0: i32) -> (i32, i32) {
    %c0_i32 = arith.constant 0 : i32
    %c0_i32_0 = arith.constant 0 : i32
    %c0_i32_1 = arith.constant 0 : i32
    return %c0_i32, %c0_i32_0 : i32, i32
  }
  func.func @transform_7(%arg0: i32) -> (i32, i32) {
    %c0_i32 = arith.constant 0 : i32
    %c0_i32_0 = arith.constant 0 : i32
    %c0_i32_1 = arith.constant 0 : i32
    return %c0_i32, %c0_i32_0 : i32, i32
  }
  func.func @transform_8(%arg0: i32) -> (i32, i32) {
    %c0_i32 = arith.constant 0 : i32
    %c0_i32_0 = arith.constant 0 : i32
    %c0_i32_1 = arith.constant 0 : i32
    return %c0_i32, %c0_i32_0 : i32, i32
  }
  func.func @transform_9(%arg0: i32) -> (i32, i32) {
    %c0_i32 = arith.constant 0 : i32
    %c0_i32_0 = arith.constant 0 : i32
    return %arg0, %c0_i32 : i32, i32
  }
  func.func @transform_10(%arg0: i32) -> (i32, i32) {
    %c0_i32 = arith.constant 0 : i32
    %c0_i32_0 = arith.constant 0 : i32
    return %arg0, %c0_i32 : i32, i32
  }
}

</mosaic_0001>

<bundles_post_ra>
// kernel: tpu_custom_call.1
= control target key start
LH: loop header
LB: loop body
LE: loop exit
PB: predicated region body
PF: predicated region fallthrough
CT: control target
= control target key end

     0   :  { %16 = vsyncpa [#allocation3], 0  ;;  %s1213_s0 = inlined_call_operand.hbm [shape: f32[8,128], index: 0, kind: input, shape index: {}]   ;;  %s1214_s1 = inlined_call_operand.hbm [shape: f32[128,128], index: 1, kind: input, shape index: {}]   ;;  %s1215_s2 = inlined_call_operand.vmem [shape: f32[1,128], index: 2, kind: input, shape index: {}]   ;;  %s1216_s3 = inlined_call_operand.hbm [shape: f32[128,128], index: 3, kind: input, shape index: {}]   ;;  %s1217_s4 = inlined_call_operand.vmem [shape: f32[1,128], index: 4, kind: input, shape index: {}]   ;;  %s1218_s5 = inlined_call_operand.hbm [shape: f32[128,128], index: 5, kind: input, shape index: {}]   ;;  %s1219_s6 = inlined_call_operand.vmem [shape: f32[1,128], index: 6, kind: input, shape index: {}]   ;;  %s1220_s7 = inlined_call_operand.hbm [shape: f32[128,128], index: 7, kind: input, shape index: {}]   ;;  %s1221_s8 = inlined_call_operand.vmem [shape: f32[1,128], index: 8, kind: input, shape index: {}]   ;;  %s1222_s9 = inlined_call_operand.hbm [shape: f32[8,128], index: 9, kind: output, shape index: {0}]   ;;  %s1223_s10 = inlined_call_operand.hbm [shape: f32[8,128], index: 10, kind: output, shape index: {1}]  }
   0x1   :  { %17 = vsyncpa [#allocation6], 0 }
   0x2   :  { %18 = vsyncpa [#allocation9], 0 }
   0x3   :  { %19 = vsyncpa [#allocation4], 0 }
   0x4   :  { %20 = vsyncpa [#allocation13], 0  ;;  %s998_s13 = smov [#allocation5]   ;;  %s834_s17 = scalar_lea.hbm %s1214_s1, 2048 }
   0x5   :  { %s36_s14 = sshll.u32 %s998_s13, 4  ;;  %p835_p0 = scmp.ne.s32.totalorder %s1214_s1, %s834_s17  ;;  %s37_s14 = int_to_ptr.vmem [resolvable:$true] %s36_s14 }
   0x6   :  { %p838_p1 = scmp.lt.u32.totalorder %s834_s17, %s1214_s1 }
   0x8   :  { %p840_p2 = pnand %p838_p1, %p835_p0 }
   0xa   :  { %843 = shalt.err (!%p840_p2)
}
   0xb   :  { %s844_s22 = scalar_lea.vmem %s37_s14, 2048  ;;  %p849_p4 = scmp.lt.s32.totalorder %s37_s14, %s37_s14 }
   0xc   :  { %p845_p3 = scmp.ne.s32.totalorder %s37_s14, %s844_s22  ;;  %p850_p5 = scmp.lt.s32.totalorder %s844_s22, %s844_s22 }
   0xe   :  { %p851_p6 = por %p850_p5, %p849_p4 }
  0x10   :  { %p852_p7 = pnand %p851_p6, %p845_p3 }
  0x12   :  { %855 = shalt.err (!%p852_p7)
}
  0x13   :  { %s999_s23 = smov 128   ;;  %s1000_s24 = smov 8  }
  0x14   :  { %42 = dma.hbm_to_vmem [thread:$0]  %s1214_s1, 2048, %s37_s14, [#allocation6], %s999_s23, %s999_s23, %s1000_s24  }
  0x15   :  { %s1001_s27 = smov [#allocation8]   ;;  %s1002_s29 = smov [#allocation2]  }
  0x16   :  { %s64_s28 = sshll.u32 %s1001_s27, 4  ;;  %s27_s30 = sshll.u32 %s1002_s29, 4  ;;  %s65_s28 = int_to_ptr.vmem [resolvable:$true] %s64_s28  ;;  %s28_s30 = int_to_ptr.vmem [resolvable:$true] %s27_s30 }
  0x17   :  { %s856_s13 = scalar_lea.hbm %s1218_s5, 2048 }
  0x18   :  { %p857_p8 = scmp.ne.s32.totalorder %s1218_s5, %s856_s13  ;;  %p860_p9 = scmp.lt.u32.totalorder %s856_s13, %s1218_s5 }
  0x1a   :  { %p862_p10 = pnand %p860_p9, %p857_p8 }
  0x1c   :  { %865 = shalt.err (!%p862_p10)
}
  0x1d   :  { %s866_s1 = scalar_lea.vmem %s65_s28, 2048  ;;  %p871_p12 = scmp.lt.s32.totalorder %s65_s28, %s65_s28 }
  0x1e   :  { %p867_p11 = scmp.ne.s32.totalorder %s65_s28, %s866_s1  ;;  %p872_p13 = scmp.lt.s32.totalorder %s866_s1, %s866_s1 }
  0x20   :  { %p873_p0 = por %p872_p13, %p871_p12 }
  0x22   :  { %p874_p1 = pnand %p873_p0, %p867_p11 }
  0x24   :  { %877 = shalt.err (!%p874_p1)
}
  0x25   :  { %70 = dma.hbm_to_vmem [thread:$0]  %s1218_s5, 2048, %s65_s28, [#allocation9], %s999_s23, %s999_s23, %s1000_s24  }
  0x26   :  { %s878_s22 = scalar_lea.hbm %s1213_s0, 128 }
  0x27   :  { %p879_p2 = scmp.ne.s32.totalorder %s1213_s0, %s878_s22  ;;  %p882_p3 = scmp.lt.u32.totalorder %s878_s22, %s1213_s0 }
  0x29   :  { %p884_p4 = pnand %p882_p3, %p879_p2 }
  0x2b   :  { %887 = shalt.err (!%p884_p4)
}
  0x2c   :  { %s888_s11 = scalar_lea.vmem %s28_s30, 128  ;;  %p893_p6 = scmp.lt.s32.totalorder %s28_s30, %s28_s30 }
  0x2d   :  { %p889_p5 = scmp.ne.s32.totalorder %s28_s30, %s888_s11  ;;  %p894_p7 = scmp.lt.s32.totalorder %s888_s11, %s888_s11 }
  0x2f   :  { %p895_p8 = por %p894_p7, %p893_p6 }
  0x31   :  { %p896_p9 = pnand %p895_p8, %p889_p5 }
  0x33   :  { %899 = shalt.err (!%p896_p9)
}
  0x34   :  { %30 = dma.hbm_to_vmem [thread:$0]  %s1213_s0, 128, %s28_s30, [#allocation3]  }
  0x35   :  { %s1003_s12 = smov [#allocation7]   ;;  %s1004_s15 = smov [#allocation10]  }
  0x36   :  { %s50_s13 = sshll.u32 %s1003_s12, 4  ;;  %s78_s16 = sshll.u32 %s1004_s15, 4  ;;  %s51_s13 = int_to_ptr.vmem [resolvable:$true] %s50_s13  ;;  %s79_s16 = int_to_ptr.vmem [resolvable:$true] %s78_s16 }
  0x37   :  { %s900_s1 = scalar_lea.hbm %s1216_s3, 2048 }
  0x38   :  { %p901_p10 = scmp.ne.s32.totalorder %s1216_s3, %s900_s1  ;;  %p904_p11 = scmp.lt.u32.totalorder %s900_s1, %s1216_s3 }
  0x3a   :  { %p906_p12 = pnand %p904_p11, %p901_p10 }
  0x3c   :  { %909 = shalt.err (!%p906_p12)
}
  0x3d   :  { %s910_s0 = scalar_lea.vmem %s51_s13, 2048  ;;  %p915_p0 = scmp.lt.s32.totalorder %s51_s13, %s51_s13 }
  0x3e   :  { %p911_p13 = scmp.ne.s32.totalorder %s51_s13, %s910_s0  ;;  %p916_p1 = scmp.lt.s32.totalorder %s910_s0, %s910_s0 }
  0x40   :  { %p917_p2 = por %p916_p1, %p915_p0 }
  0x42   :  { %p918_p3 = pnand %p917_p2, %p911_p13 }
  0x44   :  { %921 = shalt.err (!%p918_p3)
}
  0x45   :  { %56 = dma.hbm_to_vmem [thread:$0]  %s1216_s3, 2048, %s51_s13, [#allocation6], %s999_s23, %s999_s23, %s1000_s24  }
  0x46   :  { %s922_s27 = scalar_lea.hbm %s1220_s7, 2048 }
  0x47   :  { %p923_p4 = scmp.ne.s32.totalorder %s1220_s7, %s922_s27  ;;  %p926_p5 = scmp.lt.u32.totalorder %s922_s27, %s1220_s7 }
  0x49   :  { %p928_p6 = pnand %p926_p5, %p923_p4 }
  0x4b   :  { %931 = shalt.err (!%p928_p6)
}
  0x4c   :  { %s932_s12 = scalar_lea.vmem %s79_s16, 2048  ;;  %p937_p8 = scmp.lt.s32.totalorder %s79_s16, %s79_s16 }
  0x4d   :  { %p933_p7 = scmp.ne.s32.totalorder %s79_s16, %s932_s12  ;;  %p938_p9 = scmp.lt.s32.totalorder %s932_s12, %s932_s12 }
  0x4f   :  { %p939_p10 = por %p938_p9, %p937_p8 }
  0x51   :  { %p940_p11 = pnand %p939_p10, %p933_p7 }
  0x53   :  { %943 = shalt.err (!%p940_p11)
}
  0x54   :  { %84 = dma.hbm_to_vmem [thread:$0]  %s1220_s7, 2048, %s79_s16, [#allocation9], %s999_s23, %s999_s23, %s1000_s24  }
  0x55   :  { %988 = dma.done.wait [#allocation3], 128  }
  0x56   :  { %989 = vsyncadd [#allocation3], 4294967168 }
  0x57   :  { %990 = dma.done.wait [#allocation6], 4096  }
  0x58   :  { %991 = vsyncadd [#allocation6], 4294963200 }
  0x59   :  { %992 = dma.done.wait [#allocation9], 4096  }
  0x5a   :  { %993 = vsyncadd [#allocation9], 4294963200  ;;  %v1005_v0 = vmov 0.0|0.0   ;;  %vm1006_vm0 = vmmov 0   ;;  %v1007_v1 = vmov 0.0   ;;  %v103_v2 = vld [vmem:[#allocation5] sm:$0xff] }
  0x5b   :  { %726 = vmatprep.subr.bf16.mxu0 %v1005_v0  ;;  %618 = vmatprep.mubr.msk.f32.mxu0 %vm1006_vm0, %v1007_v1  ;;  %v104_v3 = vld [vmem:[#allocation5 + $0x8] sm:$0xff]  ;;  %v105_v4 = vld [vmem:[#allocation5 + $0x10] sm:$0xff]  ;;  %v106_v6 = vld [vmem:[#allocation5 + $0x18] sm:$0xff]  ;;  %s1008_s17 = smov [#allocation11]  }
  0x5c   :  { %750 = vmatprep.subr.bf16.mxu1 %v1005_v0  ;;  %653 = vmatprep.mubr.msk.f32.mxu1 %vm1006_vm0, %v1007_v1  ;;  %v727_v5 = vpack.c.bf16 %v104_v3, %v103_v2  ;;  %v730_v7 = vpack.c.bf16 %v106_v6, %v105_v4  ;;  %v107_v8 = vld [vmem:[#allocation5 + $0x20] sm:$0xff]  ;;  %v108_v9 = vld [vmem:[#allocation5 + $0x28] sm:$0xff]  ;;  %v109_v11 = vld [vmem:[#allocation5 + $0x30] sm:$0xff]  ;;  %s489_s18 = sshll.u32 %s1008_s17, 4  ;;  %s490_s18 = int_to_ptr.vmem [resolvable:$true] %s489_s18 }
  0x5d   :  { %v733_v10 = vpack.c.bf16 %v108_v9, %v107_v8  ;;  %v110_v12 = vld [vmem:[#allocation5 + $0x38] sm:$0xff]  ;;  %v120_v14 = vld [vmem:[#allocation7] sm:$0xff]  ;;  %v121_v15 = vld [vmem:[#allocation7 + $0x8] sm:$0xff]  ;;  %p949_p13 = scmp.lt.s32.totalorder %s490_s18, %s490_s18 }
  0x5e   :  { %728 = vmatpush3.bf16.msra.mxu0 %v727_v5  ;;  %v736_v13 = vpack.c.bf16 %v110_v12, %v109_v11  ;;  %v122_v16 = vld [vmem:[#allocation7 + $0x10] sm:$0xff]  ;;  %v111_v17 = vld [vmem:[#allocation5 + $0x40] sm:$0xff]  ;;  %v112_v18 = vld [vmem:[#allocation5 + $0x48] sm:$0xff]  ;;  %v751_v19 = vpack.c.bf16 %v121_v15, %v120_v14 }
  0x5f   :  { %729 = vmatprep.subr.bf16.mxu0 %v1005_v0  ;;  %v123_v20 = vld [vmem:[#allocation7 + $0x18] sm:$0xff]  ;;  %v739_v22 = vpack.c.bf16 %v112_v18, %v111_v17  ;;  %v124_v23 = vld [vmem:[#allocation7 + $0x20] sm:$0xff]  ;;  %v125_v24 = vld [vmem:[#allocation7 + $0x28] sm:$0xff] }
  0x60   :  { %752 = vmatpush3.bf16.msra.mxu1 %v751_v19  ;;  %v754_v21 = vpack.c.bf16 %v123_v20, %v122_v16  ;;  %v113_v25 = vld [vmem:[#allocation5 + $0x50] sm:$0xff]  ;;  %v114_v26 = vld [vmem:[#allocation5 + $0x58] sm:$0xff]  ;;  %v757_v27 = vpack.c.bf16 %v125_v24, %v124_v23  ;;  %v115_v31 = vld [vmem:[#allocation5 + $0x60] sm:$0xff] }
  0x61   :  { %753 = vmatprep.subr.bf16.mxu1 %v1005_v0  ;;  %v742_v28 = vpack.c.bf16 %v114_v26, %v113_v25  ;;  %v126_v29 = vld [vmem:[#allocation7 + $0x30] sm:$0xff]  ;;  %v127_v30 = vld [vmem:[#allocation7 + $0x38] sm:$0xff]  ;;  %v116_v32 = vld [vmem:[#allocation5 + $0x68] sm:$0xff] }
  0x62   :  { %731 = vmatpush3.bf16.msra.mxu0 %v730_v7  ;;  %v760_v33 = vpack.c.bf16 %v127_v30, %v126_v29  ;;  %v745_v34 = vpack.c.bf16 %v116_v32, %v115_v31  ;;  %v128_v35 = vld [vmem:[#allocation7 + $0x40] sm:$0xff]  ;;  %v129_v36 = vld [vmem:[#allocation7 + $0x48] sm:$0xff]  ;;  %v117_v37 = vld [vmem:[#allocation5 + $0x70] sm:$0xff] }
  0x63   :  { %732 = vmatprep.subr.bf16.mxu0 %v1005_v0  ;;  %v118_v38 = vld [vmem:[#allocation5 + $0x78] sm:$0xff]  ;;  %v763_v39 = vpack.c.bf16 %v129_v36, %v128_v35  ;;  %v130_v41 = vld [vmem:[#allocation7 + $0x50] sm:$0xff]  ;;  %v293_v43 = vld [vmem:[#allocation8] sm:$0xff] }
  0x64   :  { %755 = vmatpush3.bf16.msra.mxu1 %v754_v21  ;;  %v748_v40 = vpack.c.bf16 %v118_v38, %v117_v37  ;;  %v131_v42 = vld [vmem:[#allocation7 + $0x58] sm:$0xff]  ;;  %v294_v44 = vld [vmem:[#allocation8 + $0x8] sm:$0xff]  ;;  %v132_v48 = vld [vmem:[#allocation7 + $0x60] sm:$0xff] }
  0x65   :  { %756 = vmatprep.subr.bf16.mxu1 %v1005_v0  ;;  %v766_v45 = vpack.c.bf16 %v131_v42, %v130_v41  ;;  %v102_v46 = vld [vmem:[#allocation2] sm:$0xff]  ;;  %v775_v47 = vpack.c.bf16 %v294_v44, %v293_v43  ;;  %v133_v49 = vld [vmem:[#allocation7 + $0x68] sm:$0xff]  ;;  %v295_v50 = vld [vmem:[#allocation8 + $0x10] sm:$0xff] }
  0x66   :  { %734 = vmatpush3.bf16.msra.mxu0 %v733_v10  ;;  %v296_v51 = vld [vmem:[#allocation8 + $0x18] sm:$0xff]  ;;  %v769_v52 = vpack.c.bf16 %v133_v49, %v132_v48  ;;  %v297_v54 = vld [vmem:[#allocation8 + $0x20] sm:$0xff]  ;;  %v298_v55 = vld [vmem:[#allocation8 + $0x28] sm:$0xff] }
  0x67   :  { %735 = vmatprep.subr.bf16.mxu0 %v1005_v0  ;;  %v778_v53 = vpack.c.bf16 %v296_v51, %v295_v50  ;;  %v781_v56 = vpack.c.bf16 %v298_v55, %v297_v54  ;;  %v299_v57 = vld [vmem:[#allocation8 + $0x30] sm:$0xff]  ;;  %v300_v58 = vld [vmem:[#allocation8 + $0x38] sm:$0xff]  ;;  %v301_v60 = vld [vmem:[#allocation8 + $0x40] sm:$0xff] }
  0x68   :  { %758 = vmatpush3.bf16.msra.mxu1 %v757_v27  ;;  %v784_v59 = vpack.c.bf16 %v300_v58, %v299_v57  ;;  %v302_v61 = vld [vmem:[#allocation8 + $0x48] sm:$0xff]  ;;  %v303_v63 = vld [vmem:[#allocation8 + $0x50] sm:$0xff]  ;;  %v304_v2 = vld [vmem:[#allocation8 + $0x58] sm:$0xff] }
  0x69   :  { %759 = vmatprep.subr.bf16.mxu1 %v1005_v0  ;;  %v787_v62 = vpack.c.bf16 %v302_v61, %v301_v60  ;;  %v790_v3 = vpack.c.bf16 %v304_v2, %v303_v63  ;;  %v305_v4 = vld [vmem:[#allocation8 + $0x60] sm:$0xff]  ;;  %v306_v5 = vld [vmem:[#allocation8 + $0x68] sm:$0xff]  ;;  %v307_v7 = vld [vmem:[#allocation8 + $0x70] sm:$0xff] }
  0x6a   :  { %737 = vmatpush3.bf16.msra.mxu0 %v736_v13  ;;  %v793_v6 = vpack.c.bf16 %v306_v5, %v305_v4  ;;  %v308_v8 = vld [vmem:[#allocation8 + $0x78] sm:$0xff]  ;;  %v134_v10 = vld [vmem:[#allocation7 + $0x70] sm:$0xff]  ;;  %v310_v15 = vld [vmem:[#allocation10] sm:$0xff] }
  0x6b   :  { %738 = vmatprep.subr.bf16.mxu0 %v1005_v0  ;;  %v796_v9 = vpack.c.bf16 %v308_v8, %v307_v7  ;;  %v135_v11 = vld [vmem:[#allocation7 + $0x78] sm:$0xff]  ;;  %v311_v16 = vld [vmem:[#allocation10 + $0x8] sm:$0xff]  ;;  %v312_v21 = vld [vmem:[#allocation10 + $0x10] sm:$0xff] }
  0x6c   :  { %761 = vmatpush3.bf16.msra.mxu1 %v760_v33  ;;  %v772_v12 = vpack.c.bf16 %v135_v11, %v134_v10  ;;  %v514_v13 = vld [vmem:[%s1215_s2] ss:$0 sm:$0xff]  ;;  %v799_v20 = vpack.c.bf16 %v311_v16, %v310_v15  ;;  %v314_v25 = vld [vmem:[#allocation10 + $0x20] sm:$0xff]  ;;  %v315_v26 = vld [vmem:[#allocation10 + $0x28] sm:$0xff] }
  0x6d   :  { %762 = vmatprep.subr.bf16.mxu1 %v1005_v0  ;;  %v805_v27 = vpack.c.bf16 %v315_v26, %v314_v25  ;;  %v317_v29 = vld [vmem:[#allocation10 + $0x38] sm:$0xff]  ;;  %v318_v31 = vld [vmem:[#allocation10 + $0x40] sm:$0xff]  ;;  %v319_v32 = vld [vmem:[#allocation10 + $0x48] sm:$0xff] }
  0x6e   :  { %740 = vmatpush3.bf16.msra.mxu0 %v739_v22  ;;  %v313_v22 = vld [vmem:[#allocation10 + $0x18] sm:$0xff]  ;;  %v811_v33 = vpack.c.bf16 %v319_v32, %v318_v31  ;;  %v322_v36 = vld [vmem:[#allocation10 + $0x60] sm:$0xff]  ;;  %v323_v37 = vld [vmem:[#allocation10 + $0x68] sm:$0xff] }
  0x6f   :  { %741 = vmatprep.subr.bf16.mxu0 %v1005_v0  ;;  %v802_v24 = vpack.c.bf16 %v313_v22, %v312_v21  ;;  %v817_v38 = vpack.c.bf16 %v323_v37, %v322_v36  ;;  %v516_v41 = vld [vmem:[%s1219_s6] ss:$0 sm:$0xff]  ;;  %s944_s6 = scalar_lea.vmem %s490_s18, 128 }
  0x70   :  { %764 = vmatpush3.bf16.msra.mxu1 %v763_v39  ;;  %v324_v39 = vld [vmem:[#allocation10 + $0x70] sm:$0xff]  ;;  %v515_v48 = vld [vmem:[%s1217_s4] ss:$0 sm:$0xff]  ;;  %p945_p12 = scmp.ne.s32.totalorder %s490_s18, %s944_s6  ;;  %p950_p0 = scmp.lt.s32.totalorder %s944_s6, %s944_s6 }
  0x71   :  { %765 = vmatprep.subr.bf16.mxu1 %v1005_v0 }
  0x72   :  { %743 = vmatpush3.bf16.msra.mxu0 %v742_v28  ;;  %v316_v28 = vld [vmem:[#allocation10 + $0x30] sm:$0xff]  ;;  %p951_p1 = por %p950_p0, %p949_p13 }
  0x73   :  { %744 = vmatprep.subr.bf16.mxu0 %v1005_v0  ;;  %v808_v30 = vpack.c.bf16 %v317_v29, %v316_v28 }
  0x74   :  { %767 = vmatpush3.bf16.msra.mxu1 %v766_v45  ;;  %p952_p2 = pnand %p951_p1, %p945_p12 }
  0x75   :  { %768 = vmatprep.subr.bf16.mxu1 %v1005_v0 }
  0x76   :  { %746 = vmatpush3.bf16.msra.mxu0 %v745_v34  ;;  %v321_v34 = vld [vmem:[#allocation10 + $0x58] sm:$0xff] }
  0x77   :  { %747 = vmatprep.subr.bf16.mxu0 %v1005_v0 }
  0x78   :  { %770 = vmatpush3.bf16.msra.mxu1 %v769_v52 }
  0x79   :  { %771 = vmatprep.subr.bf16.mxu1 %v1005_v0 }
  0x7a   :  { %749 = vmatpush3.bf16.msra.mxu0 %v748_v40  ;;  %v325_v40 = vld [vmem:[#allocation10 + $0x78] sm:$0xff] }
  0x7b   :  { %774 = vmatprep.subr.bf16.mxu0 %v1005_v0  ;;  %v820_v42 = vpack.c.bf16 %v325_v40, %v324_v39 }
  0x7c   :  { %773 = vmatpush3.bf16.msra.mxu1 %v772_v12 }
  0x7d   :  { %619 = vmatmul.mubr.f32.vlgmr.msra.gmra.mrb[0].mxu0 %v102_v46  ;;  %798 = vmatprep.subr.bf16.mxu1 %v1005_v0 }
  0x7e   :  { %776 = vmatpush3.bf16.msra.mxu0 %v775_v47  ;;  %688 = vmatprep.mubr.msk.f32.mxu0 %vm1006_vm0, %v1007_v1 }
  0x7f   :  { %777 = vmatprep.subr.bf16.mxu0 %v1005_v0 }
  0x82   :  { %779 = vmatpush3.bf16.msra.mxu0 %v778_v53 }
  0x83   :  { %780 = vmatprep.subr.bf16.mxu0 %v1005_v0 }
  0x86   :  { %782 = vmatpush3.bf16.msra.mxu0 %v781_v56 }
  0x87   :  { %783 = vmatprep.subr.bf16.mxu0 %v1005_v0 }
  0x8a   :  { %785 = vmatpush3.bf16.msra.mxu0 %v784_v59 }
  0x8b   :  { %786 = vmatprep.subr.bf16.mxu0 %v1005_v0 }
  0x8e   :  { %788 = vmatpush3.bf16.msra.mxu0 %v787_v62 }
  0x8f   :  { %789 = vmatprep.subr.bf16.mxu0 %v1005_v0 }
  0x92   :  { %791 = vmatpush3.bf16.msra.mxu0 %v790_v3 }
  0x93   :  { %792 = vmatprep.subr.bf16.mxu0 %v1005_v0 }
  0x96   :  { %794 = vmatpush3.bf16.msra.mxu0 %v793_v6 }
  0x97   :  { %795 = vmatprep.subr.bf16.mxu0 %v1005_v0 }
  0x9a   :  { %797 = vmatpush3.bf16.msra.mxu0 %v796_v9 }
  0x9d   :  { %689 = vmatmul.mubr.f32.vlgmr.msra.gmra.mrb[2].mxu0 %v102_v46 }
 0x150   :  { %v209_v14 = vpop.f32.mrb[0].mxu0 }
 0x151   :  { %v210_v17 = vadd.f32 %v514_v13, %v209_v14  ;;  %v620_v18 = vpop.f32.mrb[1].mxu0 }
 0x153   :  { %v214_v19 = vmul.f32 0.01, %v210_v17  ;;  %vm213_vm1 = vcmp.gt.f32.partialorder %v210_v17, 0.0 }
 0x155   :  { %v215_v23 = vsel %vm213_vm1, %v210_v17, %v214_v19 }
 0x156   :  { %654 = vmatmul.mubr.f32.vlgmr.msra.gmra.mrb[0].mxu1 %v215_v23 }
 0x157   :  { %800 = vmatpush3.bf16.msra.mxu1 %v799_v20  ;;  %723 = vmatprep.mubr.msk.f32.mxu1 %vm1006_vm0, %v1007_v1  ;;  %v320_v1 = vld [vmem:[#allocation10 + $0x50] sm:$0xff] }
 0x158   :  { %801 = vmatprep.subr.bf16.mxu1 %v1005_v0  ;;  %v814_v35 = vpack.c.bf16 %v321_v34, %v320_v1 }
 0x15b   :  { %803 = vmatpush3.bf16.msra.mxu1 %v802_v24 }
 0x15c   :  { %804 = vmatprep.subr.bf16.mxu1 %v1005_v0 }
 0x15f   :  { %806 = vmatpush3.bf16.msra.mxu1 %v805_v27 }
 0x160   :  { %807 = vmatprep.subr.bf16.mxu1 %v1005_v0 }
 0x163   :  { %809 = vmatpush3.bf16.msra.mxu1 %v808_v30 }
 0x164   :  { %810 = vmatprep.subr.bf16.mxu1 %v1005_v0 }
 0x167   :  { %812 = vmatpush3.bf16.msra.mxu1 %v811_v33 }
 0x168   :  { %813 = vmatprep.subr.bf16.mxu1 %v1005_v0 }
 0x16b   :  { %815 = vmatpush3.bf16.msra.mxu1 %v814_v35 }
 0x16c   :  { %816 = vmatprep.subr.bf16.mxu1 %v1005_v0 }
 0x16f   :  { %818 = vmatpush3.bf16.msra.mxu1 %v817_v38 }
 0x170   :  { %v399_v43 = vpop.f32.mrb[2].mxu0  ;;  %819 = vmatprep.subr.bf16.mxu1 %v1005_v0 }
 0x171   :  { %v400_v44 = vadd.f32 %v516_v41, %v399_v43  ;;  %v690_v45 = vpop.f32.mrb[3].mxu0 }
 0x173   :  { %vm403_vm2 = vcmp.gt.f32.partialorder %v400_v44, 0.0  ;;  %v404_v46 = vmul.f32 0.01, %v400_v44  ;;  %821 = vmatpush3.bf16.msra.mxu1 %v820_v42 }
 0x175   :  { %v405_v47 = vsel %vm403_vm2, %v400_v44, %v404_v46 }
 0x176   :  { %724 = vmatmul.mubr.f32.vlgmr.msra.gmra.mrb[2].mxu1 %v405_v47 }
 0x229   :  { %v288_v49 = vpop.f32.mrb[0].mxu1 }
 0x22a   :  { %v289_v50 = vadd.f32 %v515_v48, %v288_v49  ;;  %v655_v51 = vpop.f32.mrb[1].mxu1 }
 0x22c   :  { %292 = vst [vmem:[#allocation11] sm:$0xff] %v289_v50 }
 0x22d   :  { %955 = shalt.err (!%p952_p2)
}
 0x22e   :  { %s956_s19 = scalar_lea.hbm %s1222_s9, 128 }
 0x22f   :  { %p957_p3 = scmp.ne.s32.totalorder %s1222_s9, %s956_s19  ;;  %p960_p4 = scmp.lt.u32.totalorder %s956_s19, %s1222_s9 }
 0x231   :  { %p962_p5 = pnand %p960_p4, %p957_p3 }
 0x233   :  { %965 = shalt.err (!%p962_p5)
}
 0x234   :  { %492 = dma.vmem_to_hbm [thread:$0]  %s490_s18, 128, %s1222_s9, [#allocation4]   ;;  %v517_v0 = vld [vmem:[%s1221_s8] ss:$0 sm:$0xff] }
 0x235   :  { %s1009_s27 = smov [#allocation12]  }
 0x236   :  { %s499_s29 = sshll.u32 %s1009_s27, 4  ;;  %s500_s29 = int_to_ptr.vmem [resolvable:$true] %s499_s29 }
 0x237   :  { %s966_s11 = scalar_lea.vmem %s500_s29, 128  ;;  %p971_p7 = scmp.lt.s32.totalorder %s500_s29, %s500_s29 }
 0x238   :  { %p967_p6 = scmp.ne.s32.totalorder %s500_s29, %s966_s11  ;;  %p972_p8 = scmp.lt.s32.totalorder %s966_s11, %s966_s11 }
 0x23a   :  { %p973_p9 = por %p972_p8, %p971_p7 }
 0x23c   :  { %p974_p10 = pnand %p973_p9, %p967_p6 }
 0x249   :  { %v478_v52 = vpop.f32.mrb[2].mxu1 }
 0x24a   :  { %v479_v53 = vadd.f32 %v517_v0, %v478_v52  ;;  %v725_v54 = vpop.f32.mrb[3].mxu1 }
 0x24c   :  { %482 = vst [vmem:[#allocation12] sm:$0xff] %v479_v53 }
 0x24d   :  { %977 = shalt.err (!%p974_p10)
}
 0x24e   :  { %s978_s28 = scalar_lea.hbm %s1223_s10, 128 }
 0x24f   :  { %p979_p11 = scmp.ne.s32.totalorder %s1223_s10, %s978_s28  ;;  %p982_p12 = scmp.lt.u32.totalorder %s978_s28, %s1223_s10 }
 0x251   :  { %p984_p13 = pnand %p982_p12, %p979_p11 }
 0x253   :  { %987 = shalt.err (!%p984_p13)
}
 0x254   :  { %502 = dma.vmem_to_hbm [thread:$0]  %s500_s29, 128, %s1223_s10, [#allocation13]  }
 0x255   :  { %994 = dma.done.wait [#allocation4], 128  }
 0x256   :  { %995 = vsyncadd [#allocation4], 4294967168 }
 0x257   :  { %996 = dma.done.wait [#allocation13], 128  }
 0x258   :  { %997 = vsyncadd [#allocation13], 4294967168 }
 0x259   :  { %509 = vsyncpa [#allocation3], 1 }
 0x25a   :  { %510 = vsyncpa [#allocation6], 1 }
 0x25b   :  { %511 = vsyncpa [#allocation9], 1 }
 0x25c   :  { %512 = vsyncpa [#allocation4], 1 }
 0x25d   :  { %513 = vsyncpa [#allocation13], 1 }

</bundles_post_ra>
